<compile_context>
chip_gen: v7x
topology: tpu7x:2x2x1
jax: 0.10.0
libtpu: 0.0.40
codegen_flags: <defaults>
</compile_context>

<pallas_src>
import functools

import jax
import jax.numpy as jnp
from jax.experimental import pallas as pl
from jax.experimental.pallas import tpu as pltpu


def _round_up(x, m):
    return (x + m - 1) // m * m


def _skipgram_kernel(center_ref, outside_ref, vocab_ref, out_ref, acc_ref,
                     *, pad_cols):
    """Grid = (B_tiles, V_tiles); axis 1 (V) is the reduction axis.

    center_ref  : (TB, E)   f32   per-row center embeddings (resident per B tile)
    outside_ref : (TB, E)   f32   per-row outside embeddings (resident per B tile)
    vocab_ref   : (E,  TV)  bf16  shared vocab slab tile, V on lanes
    out_ref     : (TB, 128) f32   per-row  log(sum_v exp(<v, c_b>)) - <o_b, c_b>
    acc_ref     : (TB, 1)   f32   running exp-sum accumulator (VMEM scratch)
    """
    vi = pl.program_id(1)
    nv = pl.num_programs(1)

    @pl.when(vi == 0)
    def _init():
        acc_ref[...] = jnp.zeros_like(acc_ref)

    # (TB, E) @ (E, TV) on the MXU: bf16 operands, f32 accumulate, V on lanes.
    c_bf = center_ref[...].astype(jnp.bfloat16)
    logits = jnp.dot(c_bf, vocab_ref[...], preferred_element_type=jnp.float32)
    # exp -> EUP, cross-lane sum -> XLU; both hidden under the MXU slot.
    acc_ref[...] += jnp.sum(jnp.exp(logits), axis=1, keepdims=True)

    @pl.when(vi == nv - 1)
    def _finalize():
        lsum = acc_ref[...]
        if pad_cols:
            # Padded vocab columns are exact zeros -> logits 0 -> exp(0) = 1
            # each; subtract their exact total contribution once.
            lsum = lsum - jnp.float32(pad_cols)
        dot = jnp.sum(center_ref[...] * outside_ref[...], axis=-1, keepdims=True)
        per_row = jnp.log(lsum) - dot                           # (TB, 1)
        out_ref[...] = jnp.broadcast_to(per_row, out_ref.shape)


def skipgram_loss_pallas(center_emb, outside_emb, vocab_emb, *, tb=None, tv=None):
    """center_emb/outside_emb: (B, E) f32; vocab_emb: (V, E) f32 shared slab.

    Returns the scalar skip-gram loss (== torch's -mean(log(top/lower_sum))).
    """
    B, E = center_emb.shape
    V, _ = vocab_emb.shape

    # Tile selection: TB a multiple of 8 (capped at 128).  TV big enough to
    # amortize the ~0.35us per-grid-step overhead and keep the vocab DMA
    # lane-dense, small enough that the (TB,TV) f32 logits + double-buffered
    # bf16 vocab tiles stay far below the 32 MiB VMEM limit set below
    # (v7x physical VMEM is only 64 MiB).
    TB = tb if tb is not None else (128 if B >= 128 else _round_up(B, 8))
    if tv is not None:
        TV = tv
    else:
        TV = 1024 if TB >= 128 else 2048
        TV = min(TV, _round_up(V, 128))
    B_pad = _round_up(B, TB)
    V_pad = _round_up(V, TV)

    c = jnp.zeros((B_pad, E), jnp.float32).at[:B].set(center_emb.astype(jnp.float32))
    o = jnp.zeros((B_pad, E), jnp.float32).at[:B].set(outside_emb.astype(jnp.float32))
    # Shared vocab slab, transposed so V sits on the lane axis; bf16 MXU operand.
    vt = jnp.zeros((E, V_pad), jnp.bfloat16).at[:, :V].set(
        vocab_emb.T.astype(jnp.bfloat16))

    grid = (B_pad // TB, V_pad // TV)
    kernel = functools.partial(_skipgram_kernel, pad_cols=V_pad - V)

    out = pl.pallas_call(
        kernel,
        out_shape=jax.ShapeDtypeStruct((B_pad, 128), jnp.float32),
        grid=grid,
        in_specs=[
            pl.BlockSpec((TB, E), lambda bi, vi: (bi, 0)),
            pl.BlockSpec((TB, E), lambda bi, vi: (bi, 0)),
            pl.BlockSpec((E, TV), lambda bi, vi: (0, vi)),
        ],
        out_specs=pl.BlockSpec((TB, 128), lambda bi, vi: (bi, 0)),
        scratch_shapes=[pltpu.VMEM((TB, 1), jnp.float32)],
        compiler_params=pltpu.CompilerParams(
            dimension_semantics=("parallel", "arbitrary"),
            vmem_limit_bytes=32 * 1024 * 1024,
        ),
        cost_estimate=pl.CostEstimate(
            flops=2 * B_pad * V_pad * E,
            transcendentals=B_pad * V_pad,
            bytes_accessed=(E * V_pad * 2) * (B_pad // TB)
            + 2 * B_pad * E * 4 + B_pad * 128 * 4,
        ),
    )(c, o, vt)

    # Tiny O(B) scalar epilogue (mean over the real batch rows only).
    return jnp.mean(out[:B, 0])


def skipgram_forward(params, center, outside, all_vocabs):
    """Forward pass of Skipgram.  Embedding-table gathers are thin JAX glue;
    the V-dominant matmul + exp-sum reduction runs in the Pallas kernel.

    As in the original training loop, every row of `all_vocabs` is the same
    full-vocabulary index list, so the (V, E) vocab slab is gathered ONCE and
    shared across the batch (no (B, V, E) slab in HBM).
    """
    emb = params["embedding_center"]   # forward() only ever uses embedding_center
    center_emb = jnp.take(emb, center[:, 0], axis=0)       # (B, E)
    outside_emb = jnp.take(emb, outside[:, 0], axis=0)     # (B, E)
    vocab_emb = jnp.take(emb, all_vocabs[0], axis=0)       # (V, E) shared slab
    # TODO(synk): if rows of all_vocabs ever differed per batch element, a
    # batched (B,V,E) gather path would be needed; the module's usage never does.
    return skipgram_loss_pallas(center_emb, outside_emb, vocab_emb)


def skipgram_forward_ref(params, center, outside, all_vocabs):
    """Pure-JAX reference mirroring the torch code line by line (incl. the
    (B,1)/(B,) -> (B,B) broadcast quirk), all in f32."""
    emb = params["embedding_center"]
    c = jnp.take(emb, center[:, 0], axis=0)                 # (B, E)
    o = jnp.take(emb, outside[:, 0], axis=0)                # (B, E)
    a = jnp.take(emb, all_vocabs, axis=0)                   # (B, V, E)
    top = jnp.exp(jnp.sum(o * c, axis=-1, keepdims=True))   # (B, 1)
    lower = jnp.einsum("bve,be->bv", a, c)                  # (B, V)
    lsum = jnp.sum(jnp.exp(lower), axis=1)                  # (B,)
    return -jnp.mean(jnp.log(top / lsum[None, :]))


if __name__ == "__main__":
    # Small, deterministic synthetic setup (no checkpoint loading).
    VOC_SIZE = 300
    EMB_SIZE = 32
    BATCH = 4

    key = jax.random.PRNGKey(0)
    k_c, k_o, k_ctr, k_out = jax.random.split(key, 4)

    # nn.Embedding default init N(0,1), scaled down so exp() stays finite
    # (the original torch code has no logsumexp guard; we match that).
    params = {
        "embedding_center": jax.random.normal(k_c, (VOC_SIZE, EMB_SIZE), jnp.float32) * 0.1,
        # embedding_outside exists in __init__ but is unused in forward(); kept for fidelity.
        "embedding_outside": jax.random.normal(k_o, (VOC_SIZE, EMB_SIZE), jnp.float32) * 0.1,
    }

    center = jax.random.randint(k_ctr, (BATCH, 1), 0, VOC_SIZE, dtype=jnp.int32)
    outside = jax.random.randint(k_out, (BATCH, 1), 0, VOC_SIZE, dtype=jnp.int32)
    all_vocabs = jnp.tile(jnp.arange(VOC_SIZE, dtype=jnp.int32)[None, :], (BATCH, 1))

    loss = skipgram_forward(params, center, outside, all_vocabs)
    loss = jax.block_until_ready(loss)

    # Also exercise the multi-step V reduction path (small V tile => several
    # grid steps along the reduction axis + the exact padded-column correction).
    emb = params["embedding_center"]
    loss_tiled = skipgram_loss_pallas(
        jnp.take(emb, center[:, 0], axis=0),
        jnp.take(emb, outside[:, 0], axis=0),
        jnp.take(emb, all_vocabs[0], axis=0),
        tv=128,
    )
    loss_tiled = jax.block_until_ready(loss_tiled)

    loss_ref = skipgram_forward_ref(params, center, outside, all_vocabs)
    # bf16 MXU operands -> compare at bf16-appropriate tolerance.
    assert jnp.allclose(loss, loss_ref, rtol=5e-3, atol=5e-3), (loss, loss_ref)
    assert jnp.allclose(loss_tiled, loss_ref, rtol=5e-3, atol=5e-3), (loss_tiled, loss_ref)

    print("KERNEL_OK")
</pallas_src>

<mosaic_0001>
module attributes {stable_mosaic.version = 11 : i64} {
  func.func @_skipgram_kernel(%arg0: i32, %arg1: i32, %arg2: memref<8x32xf32, #tpu.memory_space<vmem>>, %arg3: memref<8x32xf32, #tpu.memory_space<vmem>>, %arg4: memref<32x384xbf16, #tpu.memory_space<vmem>>, %arg5: memref<8x128xf32, #tpu.memory_space<vmem>>, %arg6: memref<8x1xf32, #tpu.memory_space<vmem>>) attributes {dimension_semantics = [#tpu.dimension_semantics<parallel>, #tpu.dimension_semantics<arbitrary>], iteration_bounds = array<i64: 1, 1>, scalar_prefetch = 0 : i64, scratch_operands = 1 : i64, tpu.core_type = #tpu.core_type<tc>, window_params = [{transform_indices = @transform_0, window_bounds = array<i64: 8, 32>}, {transform_indices = @transform_1, window_bounds = array<i64: 8, 32>}, {transform_indices = @transform_2, window_bounds = array<i64: 32, 384>}, {transform_indices = @transform_3, window_bounds = array<i64: 8, 128>}]} {
    %c0_i32 = arith.constant 0 : i32
    %0 = arith.cmpi eq, %arg1, %c0_i32 : i32
    %1 = arith.extui %0 : i1 to i32
    %c0_i32_0 = arith.constant 0 : i32
    %2 = arith.cmpi ne, %1, %c0_i32_0 : i32
    scf.if %2 {
      %cst_11 = arith.constant 0.000000e+00 : f32
      %16 = vector.broadcast %cst_11 : f32 to vector<8x1xf32>
      %c0_12 = arith.constant 0 : index
      %c0_13 = arith.constant 0 : index
      %17 = vector.load %arg6[%c0_12, %c0_13] : memref<8x1xf32, #tpu.memory_space<vmem>>, vector<8x1xf32>
      tpu.vector_store %arg6[%c0_12, %c0_13], %16 {strides = array<i32>} : memref<8x1xf32, #tpu.memory_space<vmem>>, vector<8x1xf32>,
    } else {
    }
    %c0 = arith.constant 0 : index
    %c0_1 = arith.constant 0 : index
    %3 = vector.load %arg2[%c0, %c0_1] : memref<8x32xf32, #tpu.memory_space<vmem>>, vector<8x32xf32>
    %4 = arith.truncf %3 : vector<8x32xf32> to vector<8x32xbf16>
    %c0_2 = arith.constant 0 : index
    %c0_3 = arith.constant 0 : index
    %5 = vector.load %arg4[%c0_2, %c0_3] : memref<32x384xbf16, #tpu.memory_space<vmem>>, vector<32x384xbf16>
    %cst = arith.constant dense<0.000000e+00> : vector<8x384xf32>
    %6 = tpu.matmul %4, %5, %cst {dimension_numbers = #tpu.dot_dimension_numbers<[1], [0], [0], [1], [0, 0, 1, 1], [], []>} : vector<8x32xbf16>, vector<32x384xbf16>, vector<8x384xf32> -> vector<8x384xf32>
    %c0_4 = arith.constant 0 : index
    %c0_5 = arith.constant 0 : index
    %7 = vector.load %arg6[%c0_4, %c0_5] : memref<8x1xf32, #tpu.memory_space<vmem>>, vector<8x1xf32>
    %8 = math.exp %6 : vector<8x384xf32>
    %cst_6 = arith.constant dense<0.000000e+00> : vector<8xf32>
    %9 = vector.multi_reduction <add>, %8, %cst_6 [1] : vector<8x384xf32> to vector<8xf32>
    %10 = vector.shape_cast %9 : vector<8xf32> to vector<8x1xf32>
    %11 = arith.addf %7, %10 : vector<8x1xf32>
    %c0_7 = arith.constant 0 : index
    %c0_8 = arith.constant 0 : index
    %12 = vector.load %arg6[%c0_7, %c0_8] : memref<8x1xf32, #tpu.memory_space<vmem>>, vector<8x1xf32>
    tpu.vector_store %arg6[%c0_7, %c0_8], %11 {strides = array<i32>} : memref<8x1xf32, #tpu.memory_space<vmem>>, vector<8x1xf32>,
    %c0_i32_9 = arith.constant 0 : i32
    %13 = arith.cmpi eq, %arg1, %c0_i32_9 : i32
    %14 = arith.extui %13 : i1 to i32
    %c0_i32_10 = arith.constant 0 : i32
    %15 = arith.cmpi ne, %14, %c0_i32_10 : i32
    scf.if %15 {
      %c0_11 = arith.constant 0 : index
      %c0_12 = arith.constant 0 : index
      %16 = vector.load %arg6[%c0_11, %c0_12] : memref<8x1xf32, #tpu.memory_space<vmem>>, vector<8x1xf32>
      %cst_13 = arith.constant 8.400000e+01 : f32
      %17 = vector.broadcast %cst_13 : f32 to vector<8x1xf32>
      %18 = arith.subf %16, %17 : vector<8x1xf32>
      %c0_14 = arith.constant 0 : index
      %c0_15 = arith.constant 0 : index
      %19 = vector.load %arg2[%c0_14, %c0_15] : memref<8x32xf32, #tpu.memory_space<vmem>>, vector<8x32xf32>
      %c0_16 = arith.constant 0 : index
      %c0_17 = arith.constant 0 : index
      %20 = vector.load %arg3[%c0_16, %c0_17] : memref<8x32xf32, #tpu.memory_space<vmem>>, vector<8x32xf32>
      %21 = arith.mulf %19, %20 : vector<8x32xf32>
      %cst_18 = arith.constant dense<0.000000e+00> : vector<8xf32>
      %22 = vector.multi_reduction <add>, %21, %cst_18 [1] : vector<8x32xf32> to vector<8xf32>
      %23 = vector.shape_cast %22 : vector<8xf32> to vector<8x1xf32>
      %24 = math.log %18 : vector<8x1xf32>
      %25 = arith.subf %24, %23 : vector<8x1xf32>
      %26 = vector.shape_cast %25 : vector<8x1xf32> to vector<8x1xf32>
      %27 = vector.broadcast %26 : vector<8x1xf32> to vector<8x128xf32>
      %c0_19 = arith.constant 0 : index
      %c0_20 = arith.constant 0 : index
      %28 = vector.load %arg5[%c0_19, %c0_20] : memref<8x128xf32, #tpu.memory_space<vmem>>, vector<8x128xf32>
      tpu.vector_store %arg5[%c0_19, %c0_20], %27 {strides = array<i32>} : memref<8x128xf32, #tpu.memory_space<vmem>>, vector<8x128xf32>,
    } else {
    }
    return
  }
  func.func @transform_0(%arg0: i32, %arg1: i32) -> (i32, i32) {
    %c0_i32 = arith.constant 0 : i32
    %c0_i32_0 = arith.constant 0 : i32
    return %arg0, %c0_i32 : i32, i32
  }
  func.func @transform_1(%arg0: i32, %arg1: i32) -> (i32, i32) {
    %c0_i32 = arith.constant 0 : i32
    %c0_i32_0 = arith.constant 0 : i32
    return %arg0, %c0_i32 : i32, i32
  }
  func.func @transform_2(%arg0: i32, %arg1: i32) -> (i32, i32) {
    %c0_i32 = arith.constant 0 : i32
    %c0_i32_0 = arith.constant 0 : i32
    return %c0_i32, %arg1 : i32, i32
  }
  func.func @transform_3(%arg0: i32, %arg1: i32) -> (i32, i32) {
    %c0_i32 = arith.constant 0 : i32
    %c0_i32_0 = arith.constant 0 : i32
    return %arg0, %c0_i32 : i32, i32
  }
}

</mosaic_0001>

<bundles_post_ra>
// kernel: tpu_custom_call.1
= control target key start
LH: loop header
LB: loop body
LE: loop exit
PB: predicated region body
PF: predicated region fallthrough
CT: control target
= control target key end

     0   :  { %8 = vsyncpa [#allocation4], 0  ;;  %s458_s0 = inlined_call_operand.hbm [shape: f32[8,32], index: 0, kind: input, shape index: {}]   ;;  %s459_s1 = inlined_call_operand.hbm [shape: f32[8,32], index: 1, kind: input, shape index: {}]   ;;  %s460_s2 = inlined_call_operand.hbm [shape: bf16[32,384], index: 2, kind: input, shape index: {}]   ;;  %s461_s3 = inlined_call_operand.hbm [shape: f32[8,128], index: 3, kind: output, shape index: {}]  }
   0x1   :  { %9 = vsyncpa [#allocation7], 0 }
   0x2   :  { %10 = vsyncpa [#allocation5], 0  ;;  %s376_s12 = smov [#allocation6]   ;;  %s377_s14 = smov [#allocation3]  }
   0x3   :  { %s27_s13 = sshll.u32 %s376_s12, 4  ;;  %s17_s15 = sshll.u32 %s377_s14, 4  ;;  %s28_s13 = int_to_ptr.vmem [resolvable:$true] %s27_s13  ;;  %s18_s15 = int_to_ptr.vmem [resolvable:$true] %s17_s15 }
   0x4   :  { %s282_s18 = scalar_lea.hbm %s459_s1, 128 }
   0x5   :  { %p283_p0 = scmp.ne.s32.totalorder %s459_s1, %s282_s18  ;;  %p286_p1 = scmp.lt.u32.totalorder %s282_s18, %s459_s1 }
   0x7   :  { %p288_p2 = pnand %p286_p1, %p283_p0 }
   0x9   :  { %291 = shalt.err (!%p288_p2)
}
   0xa   :  { %s292_s23 = scalar_lea.vmem %s28_s13, 128  ;;  %p297_p4 = scmp.lt.s32.totalorder %s28_s13, %s28_s13 }
   0xb   :  { %p293_p3 = scmp.ne.s32.totalorder %s28_s13, %s292_s23  ;;  %p298_p5 = scmp.lt.s32.totalorder %s292_s23, %s292_s23 }
   0xd   :  { %p299_p6 = por %p298_p5, %p297_p4 }
   0xf   :  { %p300_p7 = pnand %p299_p6, %p293_p3 }
  0x11   :  { %303 = shalt.err (!%p300_p7)
}
  0x12   :  { %30 = dma.hbm_to_vmem [thread:$0]  %s459_s1, 128, %s28_s13, [#allocation7]  }
  0x13   :  { %s304_s28 = scalar_lea.hbm %s458_s0, 128 }
  0x14   :  { %p305_p8 = scmp.ne.s32.totalorder %s458_s0, %s304_s28  ;;  %p308_p9 = scmp.lt.u32.totalorder %s304_s28, %s458_s0 }
  0x16   :  { %p310_p10 = pnand %p308_p9, %p305_p8 }
  0x18   :  { %313 = shalt.err (!%p310_p10)
}
  0x19   :  { %s314_s6 = scalar_lea.vmem %s18_s15, 128  ;;  %p319_p12 = scmp.lt.s32.totalorder %s18_s15, %s18_s15 }
  0x1a   :  { %p315_p11 = scmp.ne.s32.totalorder %s18_s15, %s314_s6  ;;  %p320_p13 = scmp.lt.s32.totalorder %s314_s6, %s314_s6 }
  0x1c   :  { %p321_p0 = por %p320_p13, %p319_p12 }
  0x1e   :  { %p322_p1 = pnand %p321_p0, %p315_p11 }
  0x20   :  { %325 = shalt.err (!%p322_p1)
}
  0x21   :  { %20 = dma.hbm_to_vmem [thread:$0]  %s458_s0, 128, %s18_s15, [#allocation4]  }
  0x22   :  { %s378_s8 = smov [#allocation8]   ;;  %s326_s12 = scalar_lea.hbm %s460_s2, 768 }
  0x23   :  { %s36_s9 = sshll.u32 %s378_s8, 4  ;;  %p327_p2 = scmp.ne.s32.totalorder %s460_s2, %s326_s12  ;;  %s37_s9 = int_to_ptr.vmem [resolvable:$true] %s36_s9 }
  0x24   :  { %p330_p3 = scmp.lt.u32.totalorder %s326_s12, %s460_s2 }
  0x26   :  { %p332_p4 = pnand %p330_p3, %p327_p2 }
  0x28   :  { %335 = shalt.err (!%p332_p4)
}
  0x29   :  { %s336_s18 = scalar_lea.vmem %s37_s9, 768  ;;  %p341_p6 = scmp.lt.s32.totalorder %s37_s9, %s37_s9 }
  0x2a   :  { %p337_p5 = scmp.ne.s32.totalorder %s37_s9, %s336_s18  ;;  %p342_p7 = scmp.lt.s32.totalorder %s336_s18, %s336_s18 }
  0x2c   :  { %p343_p8 = por %p342_p7, %p341_p6 }
  0x2e   :  { %p344_p9 = pnand %p343_p8, %p337_p5 }
  0x30   :  { %347 = shalt.err (!%p344_p9)
}
  0x31   :  { %s379_s0 = smov 192   ;;  %s380_s15 = smov 12  }
  0x32   :  { %42 = dma.hbm_to_vmem [thread:$0]  %s460_s2, 768, %s37_s9, [#allocation7], %s379_s0, %s379_s0, %s380_s15  }
  0x33   :  { %370 = dma.done.wait [#allocation4], 128  }
  0x34   :  { %371 = vsyncadd [#allocation4], 4294967168 }
  0x35   :  { %372 = dma.done.wait [#allocation7], 896  }
  0x36   :  { %373 = vsyncadd [#allocation7], 4294966400  ;;  %vm57_vm0 = vcmask 7168   ;;  %v381_v0 = vmov 0.0   ;;  %v382_v1 = vmov 0   ;;  %vm383_vm1 = vmmov 0  }
  0x37   :  { %58 = vst.msk [vmem:[#allocation2] sm:$0xff] %vm57_vm0, %v381_v0  ;;  %248 = vmatprep.subr.bf16.mxu1 %v381_v0  ;;  %137 = vmatprep.mubr.bf16.mxu0 %v382_v1  ;;  %v61_v2 = vld [vmem:[#allocation8] sm:$0xff]  ;;  %v63_v3 = vld [vmem:[#allocation8 + $0xc] sm:$0xff]  ;;  %v269_v6 = vld [vmem:[#allocation8 + $0x8] ss:$12 sps:$4 sm:$0xff]   ;;  %vm101_vm2 = vcmask 261120  }
  0x38   :  { %252 = vmatprep.mubr.msk.bf16.mxu1 %vm383_vm1, %v381_v0  ;;  %265 = vset.pattern.permute.xlu1 %v382_v1  ;;  %v267_v4 = vld [vmem:[#allocation8 + $0x4] ss:$12 sps:$4 sm:$0xff]   ;;  %v236_v5 = vcombine.low %v61_v2, %v63_v3  ;;  %v270_v7 = vld [vmem:[#allocation8 + $0x1c] ss:$12 sps:$4 sm:$0xff]   ;;  %v273_v9 = vld [vmem:[#allocation8 + $0x20] ss:$12 sps:$4 sm:$0xff]  }
  0x39   :  { %266 = vset.pattern.permute.xlu0 %v382_v1  ;;  %105 = vmatprep.subr.bf16.mxu0 %v267_v4  ;;  %v272_v8 = vld [vmem:[#allocation8 + $0x18] ss:$12 sps:$4 sm:$0xff]   ;;  %v59_v10 = vld [vmem:[#allocation3] sm:$0xff]  ;;  %s384_s2 = smov [#allocation9]  }
  0x3a   :  { %106 = vmatpush1.bf16.msra.mxu0 %v236_v5  ;;  %249 = vmatpush3.bf16.msra.mxu1 %v269_v6  ;;  %v60_v11 = vpack.c.bf16 %v59_v10, %v59_v10  ;;  %v206_v25 = vld [vmem:[#allocation6] sm:$0xff]  ;;  %s226_s21 = sshll.u32 %s384_s2, 4  ;;  %s227_s21 = int_to_ptr.vmem [resolvable:$true] %s226_s21 }
  0x3b   :  { %107 = vmatprep.subr.bf16.mxu0 %v270_v7  ;;  %250 = vmatprep.subr.bf16.mxu1 %v381_v0  ;;  %v207_v28 = vmul.f32 %v206_v25, %v59_v10  ;;  %s348_s22 = scalar_lea.vmem %s227_s21, 128  ;;  %p353_p11 = scmp.lt.s32.totalorder %s227_s21, %s227_s21 }
  0x3c   :  { %p349_p10 = scmp.ne.s32.totalorder %s227_s21, %s348_s22  ;;  %p354_p12 = scmp.lt.s32.totalorder %s348_s22, %s348_s22 }
  0x3d   :  { %v208_v30 = vsel %vm101_vm2, %v207_v28, 0.0 }
  0x3e   :  { %108 = vmatpush1.bf16.msra.mxu0 %v272_v8  ;;  %251 = vmatpush3.bf16.msra.mxu1 %v273_v9  ;;  %v186_v31 = vld [vmem:[#allocation2] sm:$0xff]  ;;  %p355_p13 = por %p354_p12, %p353_p11 }
  0x40   :  { %p356_p0 = pnand %p355_p13, %p349_p10 }
  0x41   :  { %242 = vmatmul.mubr.msk.bf16.vlgmr.msra.gmra.mrb[0].mxu0 %vm101_vm2, %v60_v11  ;;  %253 = vmatmul.mubr.msk.bf16.vlgmr.msra.gmra.mrb[0].mxu1 %vm101_vm2, %v60_v11 }
 0x114   :  { %v139_v12 = vpop.f32.mrb[0].mxu0  ;;  %v180_v13 = vpop.f32.mrb[0].mxu1 }
 0x115   :  { %v187_v14 = vmul.f32 1.442695, %v139_v12  ;;  %v191_v15 = vmul.f32 1.442695, %v180_v13  ;;  %v141_v16 = vpop.f32.mrb[1].mxu0  ;;  %v254_v17 = vpop.f32.mrb[1].mxu1 }
 0x116   :  { %v189_v18 = vmul.f32 1.442695, %v141_v16  ;;  %v143_v19 = vpop.f32.mrb[2].mxu0  ;;  %v183_v20 = vpop.f32.mrb[2].mxu1 }
 0x117   :  { %274 = vpow2.f32 %v187_v14  ;;  %v144_v21 = vpop.f32.mrb[3].mxu0  ;;  %v255_v22 = vpop.f32.mrb[3].mxu1 }
 0x118   :  { %276 = vpow2.f32 %v191_v15 }
 0x119   :  { %278 = vpow2.f32 %v189_v18 }
 0x121   :  { %v275_v23 = vpop.eup %274 }
 0x122   :  { %v277_v24 = vpop.eup %276 }
 0x123   :  { %v279_v26 = vpop.eup %278 }
 0x124   :  { %v193_v27 = vadd.f32 %v279_v26, %v275_v23 }
 0x126   :  { %v194_v29 = vadd.f32 %v277_v24, %v193_v27 }
 0x128   :  { %195 = vadd.xlane.f32.xlu0 %v194_v29 }
 0x12c   :  { %209 = vadd.xlane.f32.xlu0 %v208_v30 }
 0x1b5   :  { %v196_v32 = vpop.xlane.xlu0 %195 }
 0x1b6   :  { %v197_v33 = vadd.f32 %v196_v32, %v186_v31 }
 0x1b8   :  { %199 = vst.msk [vmem:[#allocation2] sm:$0xff] %vm57_vm0, %v197_v33 }
 0x1b9   :  { %v210_v37 = vpop.xlane.xlu0 %209 }
 0x1bf   :  { %v203_v34 = vld [vmem:[#allocation2] sm:$0xff] }
 0x1c0   :  { %v244_v35 = vadd.f32 -84.0, %v203_v34 }
 0x1c2   :  { %280 = vlog2.f32 %v244_v35 }
 0x1cc   :  { %v281_v36 = vpop.eup %280 }
 0x1cd   :  { %v212_v38 = vmul.f32 0.6931472, %v281_v36 }
 0x1cf   :  { %v213_v39 = vsub.f32 %v212_v38, %v210_v37 }
 0x1d1   :  { %216 = vperm.xlu1 %265, %v213_v39  }
 0x250   :  { %v217_v40 = vpop.permute.xlu1 %216 }
 0x251   :  { %219 = vst [vmem:[#allocation9] sm:$0xff] %v217_v40 }
 0x252   :  { %359 = shalt.err (!%p356_p0)
}
 0x253   :  { %s360_s25 = scalar_lea.hbm %s461_s3, 128 }
 0x254   :  { %p361_p1 = scmp.ne.s32.totalorder %s461_s3, %s360_s25  ;;  %p364_p2 = scmp.lt.u32.totalorder %s360_s25, %s461_s3 }
 0x256   :  { %p366_p3 = pnand %p364_p2, %p361_p1 }
 0x258   :  { %369 = shalt.err (!%p366_p3)
}
 0x259   :  { %229 = dma.vmem_to_hbm [thread:$0]  %s227_s21, 128, %s461_s3, [#allocation5]  }
 0x25a   :  { %374 = dma.done.wait [#allocation5], 128  }
 0x25b   :  { %375 = vsyncadd [#allocation5], 4294967168 }
 0x25c   :  { %233 = vsyncpa [#allocation4], 1 }
 0x25d   :  { %234 = vsyncpa [#allocation7], 1 }
 0x25e   :  { %235 = vsyncpa [#allocation5], 1 }

</bundles_post_ra>
